<compile_context>
chip_gen: v7x
topology: tpu7x:2x2x1
jax: 0.10.0
libtpu: 0.0.40
codegen_flags: <defaults>
</compile_context>

<pallas_src>
import functools
import math

import jax
import jax.numpy as jnp
from jax.experimental import pallas as pl
from jax.experimental.pallas import tpu as pltpu


def _gelu_exact(x):
    # torch.nn.GELU() default: 0.5 * x * (1 + erf(x / sqrt(2))).
    # (tanh-approx GELU would route to the EUP slot and be nearly free, but it
    #  changes semantics vs. the PyTorch module, so keep erf in f32.)
    return 0.5 * x * (1.0 + jax.lax.erf(x * (1.0 / math.sqrt(2.0))))


def mixer_kernel(x_ref,
                 a1_ref, a1b_ref, a2_ref, a2b_ref,
                 c1t_ref, c1b_ref, c2t_ref, c2b_ref,
                 o_ref, act_scr, *, row_chunk):
    """One mixer layer for a block of BB batch samples.

    Grid = (B // BB, num_layers); the layer axis is innermost/"arbitrary", so
    `act_scr` (the f32 running activation, rows layout (BB*T, D)) stays
    resident in VMEM across all layers of a batch block while the next
    layer's weights are prefetched.

    x_ref   : (BB, T, D)      -- input block (only read at layer 0)
    a1_ref  : (1, H, T)  bf16 -- token  Linear(T->H) weight (PyTorch (out,in))
    a1b_ref : (1, H, 1)  f32
    a2_ref  : (1, T, H)  bf16 -- token  Linear(H->T) weight
    a2b_ref : (1, T, 1)  f32
    c1t_ref : (1, D, H)  bf16 -- channel Linear(D->H) weight, pre-transposed
    c1b_ref : (1, 1, H)  f32
    c2t_ref : (1, H, D)  bf16 -- channel Linear(H->D) weight, pre-transposed
    c2b_ref : (1, 1, D)  f32
    o_ref   : (BB, T, D)      -- written once, at the last layer
    act_scr : (BB*T, D)  f32  -- running activation (persists across steps)
    """
    layer = pl.program_id(1)
    num_layers = pl.num_programs(1)
    bb, tokens, dim = x_ref.shape
    rows = bb * tokens

    # Layer 0: seed the on-chip f32 carry from the input block.
    # (BB, T, D) -> (BB*T, D) is a leading-dim merge, layout-free.
    @pl.when(layer == 0)
    def _():
        act_scr[...] = x_ref[...].reshape(rows, dim).astype(jnp.float32)

    a1 = a1_ref[0]                                    # (H, T) bf16
    a1b = a1b_ref[0]                                  # (H, 1) f32
    a2 = a2_ref[0]                                    # (T, H) bf16
    a2b = a2b_ref[0]                                  # (T, 1) f32
    c1t = c1t_ref[0]                                  # (D, H) bf16
    c1b = c1b_ref[0]                                  # (1, H) f32
    c2t = c2t_ref[0]                                  # (H, D) bf16
    c2b = c2b_ref[0]                                  # (1, D) f32
    mm_dtype = a1.dtype

    # ---- token mixing: ONE fused matmul pipeline over the whole block ------
    # X_wide = [x_0 | x_1 | ... | x_{BB-1}] : (T, BB*D), samples side by side
    # on the lane axis, so both token matmuls run with N = BB*D instead of BB
    # separate N = D passes.  Column biases are added once per matmul (no
    # per-sample broadcasts).
    if bb == 1:
        x_wide = act_scr[...]                         # (T, D)
    else:
        x_wide = jnp.concatenate(
            [act_scr[b * tokens:(b + 1) * tokens, :] for b in range(bb)],
            axis=1)                                   # (T, BB*D)
    h = jnp.dot(a1, x_wide.astype(mm_dtype),
                preferred_element_type=jnp.float32)   # (H, BB*D) f32
    h = _gelu_exact(h + a1b)
    tok = jnp.dot(a2, h.astype(mm_dtype),
                  preferred_element_type=jnp.float32) + a2b   # (T, BB*D) f32
    # Residual, written straight back into the rows-layout carry.  The
    # BB <-> T swap is a handful of static slab copies (D stays on lanes).
    for b in range(bb):
        rsl = slice(b * tokens, (b + 1) * tokens)
        act_scr[rsl, :] = act_scr[rsl, :] + tok[:, b * dim:(b + 1) * dim]

    # ---- channel mixing: fused over all BB*T rows, tiled over row chunks ---
    # Row tiling caps the (chunk, H) hidden tensor at a few MiB so the kernel
    # fits v7x's 64 MiB VMEM at production sizes.
    start = 0
    while start < rows:
        size = min(row_chunk, rows - start)
        r = act_scr[start:start + size, :]            # (size, D) f32
        hc = jnp.dot(r.astype(mm_dtype), c1t,
                     preferred_element_type=jnp.float32)          # (size, H)
        hc = _gelu_exact(hc + c1b)
        ch = jnp.dot(hc.astype(mm_dtype), c2t,
                     preferred_element_type=jnp.float32) + c2b    # (size, D)
        act_scr[start:start + size, :] = r + ch       # residual
        start += size

    # Last layer: emit the block (leading-dim split is layout-free).
    @pl.when(layer == num_layers - 1)
    def _():
        o_ref[...] = act_scr[...].reshape(o_ref.shape).astype(o_ref.dtype)


# ---------------------------------------------------------------------------
# Generation-aware sizing helpers.
# ---------------------------------------------------------------------------
def _vmem_limit_bytes(default=64 * 1024 * 1024):
    """~80% of physical per-core VMEM (v5e/v6e: 128 MiB -> ~102 MiB,
    v7x: 64 MiB -> ~51 MiB), leaving headroom for double-buffers."""
    try:
        cap = int(pltpu.get_tpu_info().vmem_capacity_bytes)
    except Exception:
        return default
    return max(32 * 1024 * 1024, int(cap * 0.8))


def _estimate_block_vmem(bb, tokens, dim, hidden, row_chunk):
    """Rough VMEM bytes needed by one grid step at batch-block size bb."""
    f32 = 4
    rows = bb * tokens
    rc = min(rows, row_chunk)
    act = rows * dim * f32                            # carry scratch
    io = 4 * bb * tokens * dim * f32                  # x + out blocks, double-buffered
    token = (2 * tokens + hidden) * bb * dim * f32    # x_wide, tok, h intermediates
    chan = rc * (hidden + 2 * dim) * f32              # channel-chunk intermediates
    wts = 2 * 2 * (hidden * tokens + dim * hidden) * 2  # double-buffered bf16 weights
    bias = 2 * 2 * (hidden + tokens + dim) * f32
    return act + io + token + chan + wts + bias


def _pick_block_b(batch, tokens, dim, hidden, vmem_limit, row_chunk, max_bb=32):
    """Largest batch block that divides `batch` and fits the VMEM budget with
    headroom, preferring to leave >= 2 batch blocks so both TensorCores get
    work under megacore sharding (v7x)."""
    budget = int(vmem_limit * 0.7)
    divisors = [bb for bb in range(1, min(max_bb, batch) + 1) if batch % bb == 0]
    fits = [bb for bb in divisors
            if _estimate_block_vmem(bb, tokens, dim, hidden, row_chunk) <= budget]
    if not fits:
        return 1
    two_core = [bb for bb in fits if batch // bb >= 2]
    return max(two_core) if two_core else max(fits)


# ---------------------------------------------------------------------------
# One-time parameter packing (stack along L, pad T, transpose, cast to bf16).
# ---------------------------------------------------------------------------
def prepare_mixer_params(layer_params, compute_dtype=jnp.bfloat16, token_pad=8):
    """Stack per-layer weights along L, zero-pad num_tokens to a multiple of
    `token_pad` (sublane alignment; zero-padded a1 columns / a2 rows guarantee
    padded token rows never contaminate real rows), pre-transpose channel
    weights, pre-reshape biases, and cast matmul weights to the MXU dtype."""
    _, tokens = layer_params[0][0].shape
    t_pad = ((tokens + token_pad - 1) // token_pad) * token_pad
    pad = t_pad - tokens

    def pad_cols(w):   # (H, T) -> (H, T_pad), zero columns
        return jnp.pad(w, ((0, 0), (0, pad))) if pad else w

    def pad_rows(w):   # (T, H) -> (T_pad, H), zero rows
        return jnp.pad(w, ((0, pad), (0, 0))) if pad else w

    def pad_vec(b):    # (T,) -> (T_pad,)
        return jnp.pad(b, (0, pad)) if pad else b

    a1 = jnp.stack([pad_cols(p[0]) for p in layer_params]).astype(compute_dtype)
    a1b = jnp.stack([p[1] for p in layer_params])[..., None]               # (L,H,1)
    a2 = jnp.stack([pad_rows(p[2]) for p in layer_params]).astype(compute_dtype)
    a2b = jnp.stack([pad_vec(p[3]) for p in layer_params])[..., None]      # (L,Tp,1)
    c1t = jnp.stack([p[4].T for p in layer_params]).astype(compute_dtype)  # (L,D,H)
    c1b = jnp.stack([p[5] for p in layer_params])[:, None, :]              # (L,1,H)
    c2t = jnp.stack([p[6].T for p in layer_params]).astype(compute_dtype)  # (L,H,D)
    c2b = jnp.stack([p[7] for p in layer_params])[:, None, :]              # (L,1,D)
    return (a1, a1b, a2, a2b, c1t, c1b, c2t, c2b)


def mlp_mixer(x, packed_params, *, block_b=None, row_chunk=512):
    """Full MLPMixer forward as one fused pallas_call.  x: (B, T, D)."""
    a1, a1b, a2, a2b, c1t, c1b, c2t, c2b = packed_params
    batch, tokens, dim = x.shape
    num_layers, hidden, t_pad = a1.shape
    assert c1t.shape == (num_layers, dim, hidden)

    if t_pad != tokens:
        x = jnp.pad(x, ((0, 0), (0, t_pad - tokens), (0, 0)))

    vmem_limit = _vmem_limit_bytes()
    bb = (block_b if block_b is not None
          else _pick_block_b(batch, t_pad, dim, hidden, vmem_limit, row_chunk))
    assert batch % bb == 0, "batch must be divisible by the batch block size"
    rows = bb * t_pad

    def wspec(arr):
        # One layer's weight slab per grid step, indexed by the layer axis.
        return pl.BlockSpec((1,) + arr.shape[1:], lambda b, l: (l, 0, 0))

    kernel = functools.partial(mixer_kernel, row_chunk=min(rows, row_chunk))

    out = pl.pallas_call(
        kernel,
        out_shape=jax.ShapeDtypeStruct((batch, t_pad, dim), x.dtype),
        grid_spec=pltpu.PrefetchScalarGridSpec(
            num_scalar_prefetch=0,
            grid=(batch // bb, num_layers),            # batch blocks x layers
            in_specs=[
                # TODO(synk): pipeline_mode=pl.Buffered(1) on x (only read at
                # layer 0; its block changes once every L steps) would free one
                # input buffer; kept at the default for portability.
                pl.BlockSpec((bb, t_pad, dim), lambda b, l: (b, 0, 0)),   # x
                wspec(a1), wspec(a1b), wspec(a2), wspec(a2b),
                wspec(c1t), wspec(c1b), wspec(c2t), wspec(c2b),
            ],
            # Output block index ignores the layer axis; the block is written
            # once per batch block, at the last layer.
            out_specs=pl.BlockSpec((bb, t_pad, dim), lambda b, l: (b, 0, 0)),
            scratch_shapes=[pltpu.VMEM((rows, dim), jnp.float32)],
        ),
        compiler_params=pltpu.CompilerParams(
            dimension_semantics=("parallel", "arbitrary"),
            vmem_limit_bytes=vmem_limit,
        ),
        # TODO(synk): on v7x, megacore ("parallel" batch axis) re-streams each
        # layer's weights once per core; staging weights in VMEM_SHARED/CMEM
        # (or fp8 channel weights, v7x only) would halve that traffic.
    )(x, a1, a1b, a2, a2b, c1t, c1b, c2t, c2b)

    if t_pad != tokens:
        out = out[:, :tokens, :]
    return out


# ---------------------------------------------------------------------------
# Deterministic parameter initialization (mimics nn.Linear uniform init).
# ---------------------------------------------------------------------------
def init_linear(key, fan_in, fan_out, dtype=jnp.float32):
    kw, kb = jax.random.split(key)
    bound = 1.0 / math.sqrt(fan_in)
    w = jax.random.uniform(kw, (fan_out, fan_in), dtype, -bound, bound)
    b = jax.random.uniform(kb, (fan_out,), dtype, -bound, bound)
    return w, b


def init_mixer(key, num_tokens, dim, hidden_dim, num_layers):
    layer_params = []
    for _ in range(num_layers):
        key, k1, k2, k3, k4 = jax.random.split(key, 5)
        a1, a1b = init_linear(k1, num_tokens, hidden_dim)   # token Linear(T->H)
        a2, a2b = init_linear(k2, hidden_dim, num_tokens)   # token Linear(H->T)
        c1, c1b = init_linear(k3, dim, hidden_dim)          # chan  Linear(D->H)
        c2, c2b = init_linear(k4, hidden_dim, dim)          # chan  Linear(H->D)
        layer_params.append((a1, a1b, a2, a2b, c1, c1b, c2, c2b))
    return layer_params


# Pure-JAX f32 reference (mirrors the PyTorch forward literally).
def mixer_ref(x, layer_params):
    for (a1, a1b, a2, a2b, c1, c1b, c2, c2b) in layer_params:
        xt = jnp.transpose(x, (0, 2, 1))                     # (B, D, T)
        t = _gelu_exact(xt @ a1.T + a1b) @ a2.T + a2b        # (B, D, T)
        x = x + jnp.transpose(t, (0, 2, 1))
        c = _gelu_exact(x @ c1.T + c1b) @ c2.T + c2b         # (B, T, D)
        x = x + c
    return x


if __name__ == "__main__":
    configs = [
        # (B, T, D, H, L, block_b)  -- small shapes; the second config also
        # exercises token padding (T=12 -> 16) and the fused BB>1 wide path.
        (2, 8, 16, 32, 2, None),
        (4, 12, 16, 32, 3, 2),
    ]
    for (B, T, D, H, L, bb) in configs:
        key = jax.random.PRNGKey(0)
        kx, kp = jax.random.split(key)
        x = jax.random.normal(kx, (B, T, D), jnp.float32)
        layer_params = init_mixer(kp, T, D, H, L)

        packed = prepare_mixer_params(layer_params)   # stack/pad/transpose/bf16 once
        out = mlp_mixer(x, packed, block_b=bb)
        out = jax.block_until_ready(out)

        ref = mixer_ref(x, layer_params)
        assert out.shape == (B, T, D)
        # bf16 MXU operands (f32 accumulation) vs. a pure-f32 reference.
        assert jnp.allclose(out, ref, atol=5e-2, rtol=5e-2), \
            f"mismatch vs reference for config {(B, T, D, H, L, bb)}"

    print("KERNEL_OK")
</pallas_src>

<mosaic_0001>
module attributes {stable_mosaic.version = 11 : i64} {
  func.func @mixer_kernel(%arg0: i32, %arg1: i32, %arg2: memref<1x8x16xf32, #tpu.memory_space<vmem>>, %arg3: memref<1x32x8xbf16, #tpu.memory_space<vmem>>, %arg4: memref<1x32x1xf32, #tpu.memory_space<vmem>>, %arg5: memref<1x8x32xbf16, #tpu.memory_space<vmem>>, %arg6: memref<1x8x1xf32, #tpu.memory_space<vmem>>, %arg7: memref<1x16x32xbf16, #tpu.memory_space<vmem>>, %arg8: memref<1x1x32xf32, #tpu.memory_space<vmem>>, %arg9: memref<1x32x16xbf16, #tpu.memory_space<vmem>>, %arg10: memref<1x1x16xf32, #tpu.memory_space<vmem>>, %arg11: memref<1x8x16xf32, #tpu.memory_space<vmem>>, %arg12: memref<8x16xf32, #tpu.memory_space<vmem>>) attributes {dimension_semantics = [#tpu.dimension_semantics<parallel>, #tpu.dimension_semantics<arbitrary>], iteration_bounds = array<i64: 2, 2>, scalar_prefetch = 0 : i64, scratch_operands = 1 : i64, tpu.core_type = #tpu.core_type<tc>, window_params = [{transform_indices = @transform_0, window_bounds = array<i64: 1, 8, 16>}, {transform_indices = @transform_1, window_bounds = array<i64: 1, 32, 8>}, {transform_indices = @transform_2, window_bounds = array<i64: 1, 32, 1>}, {transform_indices = @transform_3, window_bounds = array<i64: 1, 8, 32>}, {transform_indices = @transform_4, window_bounds = array<i64: 1, 8, 1>}, {transform_indices = @transform_5, window_bounds = array<i64: 1, 16, 32>}, {transform_indices = @transform_6, window_bounds = array<i64: 1, 1, 32>}, {transform_indices = @transform_7, window_bounds = array<i64: 1, 32, 16>}, {transform_indices = @transform_8, window_bounds = array<i64: 1, 1, 16>}, {transform_indices = @transform_9, window_bounds = array<i64: 1, 8, 16>}]} {
    %c0_i32 = arith.constant 0 : i32
    %0 = arith.cmpi eq, %arg1, %c0_i32 : i32
    %1 = arith.extui %0 : i1 to i32
    %c0_i32_0 = arith.constant 0 : i32
    %2 = arith.cmpi ne, %1, %c0_i32_0 : i32
    scf.if %2 {
      %c0_44 = arith.constant 0 : index
      %c0_45 = arith.constant 0 : index
      %c0_46 = arith.constant 0 : index
      %61 = vector.load %arg2[%c0_44, %c0_45, %c0_46] : memref<1x8x16xf32, #tpu.memory_space<vmem>>, vector<1x8x16xf32>
      %62 = vector.shape_cast %61 : vector<1x8x16xf32> to vector<8x16xf32>
      %c0_47 = arith.constant 0 : index
      %c0_48 = arith.constant 0 : index
      %63 = vector.load %arg12[%c0_47, %c0_48] : memref<8x16xf32, #tpu.memory_space<vmem>>, vector<8x16xf32>
      tpu.vector_store %arg12[%c0_47, %c0_48], %62 {strides = array<i32>} : memref<8x16xf32, #tpu.memory_space<vmem>>, vector<8x16xf32>,
    } else {
    }
    %c0 = arith.constant 0 : index
    %c0_1 = arith.constant 0 : index
    %c0_2 = arith.constant 0 : index
    %3 = vector.load %arg3[%c0, %c0_1, %c0_2] : memref<1x32x8xbf16, #tpu.memory_space<vmem>>, vector<1x32x8xbf16>
    %4 = vector.shape_cast %3 : vector<1x32x8xbf16> to vector<32x8xbf16>
    %c0_3 = arith.constant 0 : index
    %c0_4 = arith.constant 0 : index
    %c0_5 = arith.constant 0 : index
    %5 = vector.load %arg4[%c0_3, %c0_4, %c0_5] : memref<1x32x1xf32, #tpu.memory_space<vmem>>, vector<1x32x1xf32>
    %6 = vector.shape_cast %5 : vector<1x32x1xf32> to vector<32x1xf32>
    %c0_6 = arith.constant 0 : index
    %c0_7 = arith.constant 0 : index
    %c0_8 = arith.constant 0 : index
    %7 = vector.load %arg5[%c0_6, %c0_7, %c0_8] : memref<1x8x32xbf16, #tpu.memory_space<vmem>>, vector<1x8x32xbf16>
    %8 = vector.shape_cast %7 : vector<1x8x32xbf16> to vector<8x32xbf16>
    %c0_9 = arith.constant 0 : index
    %c0_10 = arith.constant 0 : index
    %c0_11 = arith.constant 0 : index
    %9 = vector.load %arg6[%c0_9, %c0_10, %c0_11] : memref<1x8x1xf32, #tpu.memory_space<vmem>>, vector<1x8x1xf32>
    %10 = vector.shape_cast %9 : vector<1x8x1xf32> to vector<8x1xf32>
    %c0_12 = arith.constant 0 : index
    %c0_13 = arith.constant 0 : index
    %c0_14 = arith.constant 0 : index
    %11 = vector.load %arg7[%c0_12, %c0_13, %c0_14] : memref<1x16x32xbf16, #tpu.memory_space<vmem>>, vector<1x16x32xbf16>
    %12 = vector.shape_cast %11 : vector<1x16x32xbf16> to vector<16x32xbf16>
    %c0_15 = arith.constant 0 : index
    %c0_16 = arith.constant 0 : index
    %c0_17 = arith.constant 0 : index
    %13 = vector.load %arg8[%c0_15, %c0_16, %c0_17] : memref<1x1x32xf32, #tpu.memory_space<vmem>>, vector<1x1x32xf32>
    %14 = vector.shape_cast %13 : vector<1x1x32xf32> to vector<1x32xf32>
    %c0_18 = arith.constant 0 : index
    %c0_19 = arith.constant 0 : index
    %c0_20 = arith.constant 0 : index
    %15 = vector.load %arg9[%c0_18, %c0_19, %c0_20] : memref<1x32x16xbf16, #tpu.memory_space<vmem>>, vector<1x32x16xbf16>
    %16 = vector.shape_cast %15 : vector<1x32x16xbf16> to vector<32x16xbf16>
    %c0_21 = arith.constant 0 : index
    %c0_22 = arith.constant 0 : index
    %c0_23 = arith.constant 0 : index
    %17 = vector.load %arg10[%c0_21, %c0_22, %c0_23] : memref<1x1x16xf32, #tpu.memory_space<vmem>>, vector<1x1x16xf32>
    %18 = vector.shape_cast %17 : vector<1x1x16xf32> to vector<1x16xf32>
    %c0_24 = arith.constant 0 : index
    %c0_25 = arith.constant 0 : index
    %19 = vector.load %arg12[%c0_24, %c0_25] : memref<8x16xf32, #tpu.memory_space<vmem>>, vector<8x16xf32>
    %20 = arith.truncf %19 : vector<8x16xf32> to vector<8x16xbf16>
    %cst = arith.constant dense<0.000000e+00> : vector<32x16xf32>
    %21 = tpu.matmul %4, %20, %cst {dimension_numbers = #tpu.dot_dimension_numbers<[1], [0], [0], [1], [0, 0, 1, 1], [], []>} : vector<32x8xbf16>, vector<8x16xbf16>, vector<32x16xf32> -> vector<32x16xf32>
    %22 = vector.broadcast %6 : vector<32x1xf32> to vector<32x16xf32>
    %23 = arith.addf %21, %22 : vector<32x16xf32>
    %cst_26 = arith.constant 5.000000e-01 : f32
    %24 = vector.broadcast %cst_26 : f32 to vector<32x16xf32>
    %25 = arith.mulf %24, %23 : vector<32x16xf32>
    %cst_27 = arith.constant 0.707106769 : f32
    %26 = vector.broadcast %cst_27 : f32 to vector<32x16xf32>
    %27 = arith.mulf %23, %26 : vector<32x16xf32>
    %28 = math.erf %27 : vector<32x16xf32>
    %cst_28 = arith.constant 1.000000e+00 : f32
    %29 = vector.broadcast %cst_28 : f32 to vector<32x16xf32>
    %30 = arith.addf %29, %28 : vector<32x16xf32>
    %31 = arith.mulf %25, %30 : vector<32x16xf32>
    %32 = arith.truncf %31 : vector<32x16xf32> to vector<32x16xbf16>
    %cst_29 = arith.constant dense<0.000000e+00> : vector<8x16xf32>
    %33 = tpu.matmul %8, %32, %cst_29 {dimension_numbers = #tpu.dot_dimension_numbers<[1], [0], [0], [1], [0, 0, 1, 1], [], []>} : vector<8x32xbf16>, vector<32x16xbf16>, vector<8x16xf32> -> vector<8x16xf32>
    %34 = vector.broadcast %10 : vector<8x1xf32> to vector<8x16xf32>
    %35 = arith.addf %33, %34 : vector<8x16xf32>
    %c0_30 = arith.constant 0 : index
    %c0_31 = arith.constant 0 : index
    %36 = vector.load %arg12[%c0_30, %c0_31] : memref<8x16xf32, #tpu.memory_space<vmem>>, vector<8x16xf32>
    %37 = arith.addf %36, %35 : vector<8x16xf32>
    %c0_32 = arith.constant 0 : index
    %c0_33 = arith.constant 0 : index
    %38 = vector.load %arg12[%c0_32, %c0_33] : memref<8x16xf32, #tpu.memory_space<vmem>>, vector<8x16xf32>
    tpu.vector_store %arg12[%c0_32, %c0_33], %37 {strides = array<i32>} : memref<8x16xf32, #tpu.memory_space<vmem>>, vector<8x16xf32>,
    %c0_34 = arith.constant 0 : index
    %c0_35 = arith.constant 0 : index
    %39 = vector.load %arg12[%c0_34, %c0_35] : memref<8x16xf32, #tpu.memory_space<vmem>>, vector<8x16xf32>
    %40 = arith.truncf %39 : vector<8x16xf32> to vector<8x16xbf16>
    %cst_36 = arith.constant dense<0.000000e+00> : vector<8x32xf32>
    %41 = tpu.matmul %40, %12, %cst_36 {dimension_numbers = #tpu.dot_dimension_numbers<[1], [0], [0], [1], [0, 0, 1, 1], [], []>} : vector<8x16xbf16>, vector<16x32xbf16>, vector<8x32xf32> -> vector<8x32xf32>
    %42 = vector.broadcast %14 : vector<1x32xf32> to vector<8x32xf32>
    %43 = arith.addf %41, %42 : vector<8x32xf32>
    %cst_37 = arith.constant 5.000000e-01 : f32
    %44 = vector.broadcast %cst_37 : f32 to vector<8x32xf32>
    %45 = arith.mulf %44, %43 : vector<8x32xf32>
    %cst_38 = arith.constant 0.707106769 : f32
    %46 = vector.broadcast %cst_38 : f32 to vector<8x32xf32>
    %47 = arith.mulf %43, %46 : vector<8x32xf32>
    %48 = math.erf %47 : vector<8x32xf32>
    %cst_39 = arith.constant 1.000000e+00 : f32
    %49 = vector.broadcast %cst_39 : f32 to vector<8x32xf32>
    %50 = arith.addf %49, %48 : vector<8x32xf32>
    %51 = arith.mulf %45, %50 : vector<8x32xf32>
    %52 = arith.truncf %51 : vector<8x32xf32> to vector<8x32xbf16>
    %cst_40 = arith.constant dense<0.000000e+00> : vector<8x16xf32>
    %53 = tpu.matmul %52, %16, %cst_40 {dimension_numbers = #tpu.dot_dimension_numbers<[1], [0], [0], [1], [0, 0, 1, 1], [], []>} : vector<8x32xbf16>, vector<32x16xbf16>, vector<8x16xf32> -> vector<8x16xf32>
    %54 = vector.broadcast %18 : vector<1x16xf32> to vector<8x16xf32>
    %55 = arith.addf %53, %54 : vector<8x16xf32>
    %56 = arith.addf %39, %55 : vector<8x16xf32>
    %c0_41 = arith.constant 0 : index
    %c0_42 = arith.constant 0 : index
    %57 = vector.load %arg12[%c0_41, %c0_42] : memref<8x16xf32, #tpu.memory_space<vmem>>, vector<8x16xf32>
    tpu.vector_store %arg12[%c0_41, %c0_42], %56 {strides = array<i32>} : memref<8x16xf32, #tpu.memory_space<vmem>>, vector<8x16xf32>,
    %c1_i32 = arith.constant 1 : i32
    %58 = arith.cmpi eq, %arg1, %c1_i32 : i32
    %59 = arith.extui %58 : i1 to i32
    %c0_i32_43 = arith.constant 0 : i32
    %60 = arith.cmpi ne, %59, %c0_i32_43 : i32
    scf.if %60 {
      %c0_44 = arith.constant 0 : index
      %c0_45 = arith.constant 0 : index
      %61 = vector.load %arg12[%c0_44, %c0_45] : memref<8x16xf32, #tpu.memory_space<vmem>>, vector<8x16xf32>
      %62 = vector.shape_cast %61 : vector<8x16xf32> to vector<1x8x16xf32>
      %c0_46 = arith.constant 0 : index
      %c0_47 = arith.constant 0 : index
      %c0_48 = arith.constant 0 : index
      %63 = vector.load %arg11[%c0_46, %c0_47, %c0_48] : memref<1x8x16xf32, #tpu.memory_space<vmem>>, vector<1x8x16xf32>
      tpu.vector_store %arg11[%c0_46, %c0_47, %c0_48], %62 {strides = array<i32>} : memref<1x8x16xf32, #tpu.memory_space<vmem>>, vector<1x8x16xf32>,
    } else {
    }
    return
  }
  func.func @transform_0(%arg0: i32, %arg1: i32) -> (i32, i32, i32) {
    %c0_i32 = arith.constant 0 : i32
    %c0_i32_0 = arith.constant 0 : i32
    %c0_i32_1 = arith.constant 0 : i32
    return %arg0, %c0_i32, %c0_i32_0 : i32, i32, i32
  }
  func.func @transform_1(%arg0: i32, %arg1: i32) -> (i32, i32, i32) {
    %c0_i32 = arith.constant 0 : i32
    %c0_i32_0 = arith.constant 0 : i32
    %c0_i32_1 = arith.constant 0 : i32
    return %arg1, %c0_i32, %c0_i32_0 : i32, i32, i32
  }
  func.func @transform_2(%arg0: i32, %arg1: i32) -> (i32, i32, i32) {
    %c0_i32 = arith.constant 0 : i32
    %c0_i32_0 = arith.constant 0 : i32
    %c0_i32_1 = arith.constant 0 : i32
    return %arg1, %c0_i32, %c0_i32_0 : i32, i32, i32
  }
  func.func @transform_3(%arg0: i32, %arg1: i32) -> (i32, i32, i32) {
    %c0_i32 = arith.constant 0 : i32
    %c0_i32_0 = arith.constant 0 : i32
    %c0_i32_1 = arith.constant 0 : i32
    return %arg1, %c0_i32, %c0_i32_0 : i32, i32, i32
  }
  func.func @transform_4(%arg0: i32, %arg1: i32) -> (i32, i32, i32) {
    %c0_i32 = arith.constant 0 : i32
    %c0_i32_0 = arith.constant 0 : i32
    %c0_i32_1 = arith.constant 0 : i32
    return %arg1, %c0_i32, %c0_i32_0 : i32, i32, i32
  }
  func.func @transform_5(%arg0: i32, %arg1: i32) -> (i32, i32, i32) {
    %c0_i32 = arith.constant 0 : i32
    %c0_i32_0 = arith.constant 0 : i32
    %c0_i32_1 = arith.constant 0 : i32
    return %arg1, %c0_i32, %c0_i32_0 : i32, i32, i32
  }
  func.func @transform_6(%arg0: i32, %arg1: i32) -> (i32, i32, i32) {
    %c0_i32 = arith.constant 0 : i32
    %c0_i32_0 = arith.constant 0 : i32
    %c0_i32_1 = arith.constant 0 : i32
    return %arg1, %c0_i32, %c0_i32_0 : i32, i32, i32
  }
  func.func @transform_7(%arg0: i32, %arg1: i32) -> (i32, i32, i32) {
    %c0_i32 = arith.constant 0 : i32
    %c0_i32_0 = arith.constant 0 : i32
    %c0_i32_1 = arith.constant 0 : i32
    return %arg1, %c0_i32, %c0_i32_0 : i32, i32, i32
  }
  func.func @transform_8(%arg0: i32, %arg1: i32) -> (i32, i32, i32) {
    %c0_i32 = arith.constant 0 : i32
    %c0_i32_0 = arith.constant 0 : i32
    %c0_i32_1 = arith.constant 0 : i32
    return %arg1, %c0_i32, %c0_i32_0 : i32, i32, i32
  }
  func.func @transform_9(%arg0: i32, %arg1: i32) -> (i32, i32, i32) {
    %c0_i32 = arith.constant 0 : i32
    %c0_i32_0 = arith.constant 0 : i32
    %c0_i32_1 = arith.constant 0 : i32
    return %arg0, %c0_i32, %c0_i32_0 : i32, i32, i32
  }
}

</mosaic_0001>

<bundles_post_ra>
// kernel: tpu_custom_call.1
= control target key start
LH: loop header
LB: loop body
LE: loop exit
PB: predicated region body
PF: predicated region fallthrough
CT: control target
= control target key end

     0   :  { %s2590_s0 = inlined_call_operand.hbm [shape: f32[2,8,16], index: 0, kind: input, shape index: {}]   ;;  %s2591_s1 = inlined_call_operand.hbm [shape: bf16[2,32,8], index: 1, kind: input, shape index: {}]   ;;  %s2592_s2 = inlined_call_operand.hbm [shape: f32[2,32,1], index: 2, kind: input, shape index: {}]   ;;  %s2593_s3 = inlined_call_operand.hbm [shape: bf16[2,8,32], index: 3, kind: input, shape index: {}]   ;;  %s2594_s4 = inlined_call_operand.hbm [shape: f32[2,8,1], index: 4, kind: input, shape index: {}]   ;;  %s2595_s5 = inlined_call_operand.hbm [shape: bf16[2,16,32], index: 5, kind: input, shape index: {}]   ;;  %s2596_s6 = inlined_call_operand.hbm [shape: f32[2,1,32], index: 6, kind: input, shape index: {}]   ;;  %s2597_s7 = inlined_call_operand.hbm [shape: bf16[2,32,16], index: 7, kind: input, shape index: {}]   ;;  %s2598_s8 = inlined_call_operand.hbm [shape: f32[2,1,16], index: 8, kind: input, shape index: {}]   ;;  %s2599_s9 = inlined_call_operand.hbm [shape: f32[2,8,16], index: 9, kind: output, shape index: {}]  }
   0x1   :  { %2628 = sst [smem:[#allocation34_spill]] %s2590_s0 }
   0x2   :  { %2629 = sst [smem:[#allocation35_spill]] %s2591_s1 }
   0x3   :  { %2630 = sst [smem:[#allocation36_spill]] %s2592_s2 }
   0x4   :  { %2631 = sst [smem:[#allocation37_spill]] %s2593_s3 }
   0x5   :  { %2632 = sst [smem:[#allocation38_spill]] %s2594_s4 }
   0x6   :  { %2633 = sst [smem:[#allocation39_spill]] %s2595_s5 }
   0x7   :  { %2634 = sst [smem:[#allocation40_spill]] %s2596_s6 }
   0x8   :  { %2635 = sst [smem:[#allocation41_spill]] %s2597_s7 }
   0x9   :  { %2636 = sst [smem:[#allocation42_spill]] %s2598_s8 }
   0xa   :  { %2637 = sst [smem:[#allocation43_spill]] %s2599_s9 }
   0xb   :  { %14 = vsyncpa [#allocation4], 0 }
   0xc   :  { %16 = vsyncpa [#allocation4 + $0x1], 0 }
   0xd   :  { %17 = vsyncpa [#allocation7], 0 }
   0xe   :  { %19 = vsyncpa [#allocation7 + $0x1], 0 }
   0xf   :  { %20 = vsyncpa [#allocation10], 0 }
  0x10   :  { %22 = vsyncpa [#allocation10 + $0x1], 0 }
  0x11   :  { %23 = vsyncpa [#allocation13], 0 }
  0x12   :  { %25 = vsyncpa [#allocation13 + $0x1], 0 }
  0x13   :  { %26 = vsyncpa [#allocation16], 0 }
  0x14   :  { %28 = vsyncpa [#allocation16 + $0x1], 0 }
  0x15   :  { %29 = vsyncpa [#allocation5], 0 }
  0x16   :  { %31 = vsyncpa [#allocation5 + $0x1], 0  ;;  %s1973_s30 = smov 0   ;;  %s1975_s10 = smov 0  }
  0x17   :  { %s1977_s11 = smov 0   ;;  %s1979_s12 = smov 0  }
  0x18   :  { %s1981_s13 = smov 0   ;;  %s1983_s14 = smov 0  }
  0x19   :  { %s1985_s15 = smov 0   ;;  %s1987_s16 = smov 0  }
  0x1a   :  { %s1989_s17 = smov 0   ;;  %s1991_s18 = smov 0  }
  0x1b   :  { %s1993_s19 = smov 0  }
  0x1c LB: > { %2638 = sst [smem:[#allocation25_spill]] %s1872_s11  ;;  %p2604_p0 = scmp.eq.s32.totalorder %s1904_s19, 0  ;;  %s1904_s19 = sphi %s1993_s19, %s37_s19   ;;  %s1900_s18 = sphi %s1991_s18, %s2700_s18   ;;  %s1896_s17 = sphi %s1989_s17, %s2706_s17   ;;  %s1892_s16 = sphi %s1987_s16, %s2698_s16   ;;  %s1888_s15 = sphi %s1985_s15, %s2705_s15   ;;  %s1884_s14 = sphi %s1983_s14, %s2697_s14   ;;  %s1880_s13 = sphi %s1981_s13, %s2704_s13   ;;  %s1876_s12 = sphi %s1979_s12, %s2703_s12   ;;  %s1872_s11 = sphi %s1977_s11, %s2695_s11   ;;  %s1868_s10 = sphi %s1975_s10, %s2702_s10   ;;  %s1864_s30 = sphi %s1973_s30, %s2701_s30  }
  0x1d   : > { %2639 = sst [smem:[#allocation26_spill]] %s1884_s14  ;;  %p89_p1 = scmp.ne.s32.totalorder %s1872_s11, %s1868_s10 }
  0x1e   : > { %2640 = sst [smem:[#allocation27_spill]] %s1888_s15  ;;  %p2603_p2 = scmp.lt.s32.totalorder %s1904_s19, 4 }
  0x1f   : > { %2641 = sst [smem:[#allocation28_spill]] %s1892_s16  ;;  %s2034_s21 = sand.u32 1, %s1904_s19  }
  0x20   : > { %2642 = sst [smem:[#allocation29_spill]] %s1900_s18  ;;  %p91_p3 = por %p89_p1, %p2604_p0 }
  0x21   : > { %s2039_s22 = sand.u32 1, %s1872_s11   ;;  %s2601_s23 = sshll.u32 %s1896_s17, 8 }
  0x22   : > { %s2602_s24 = sshll.u32 %s2039_s22, 4  ;;  %s2643_s1 = sld [smem:[#allocation35_spill]] }
  0x23   : > { %p2052_p4 = pnand %p2603_p2, %p91_p3  ;;  %s349_s29 = scalar_lea.vmem [#allocation6], %s2602_s24 }
  0x24   : > { %s356_s20 = sshll.u32 %s349_s29, 4  ;;  %s2058_s20 = int_to_ptr.vmem [resolvable:$true] %s356_s20 }
  0x25   : > { %s2644_s28 = scalar_select %p2052_p4, 1, 0 }
  0x26   : > { %p2066_p7 = pneg %p2052_p4 }
  0x28   : > { %s2048_s27 = scalar_lea.hbm %s2643_s1, %s2601_s23  ;;  %s1501_s24 = scalar_lea.hbm %s2643_s1, 512 }
  0x29   : > { %s1496_s25 = scalar_lea.hbm %s2048_s27, 256  ;;  %p1502_p10 = scmp.lt.u32.totalorder %s2048_s27, %s2643_s1 }
  0x2a   : > { %p1497_p6 = scmp.ne.s32.totalorder %s2048_s27, %s1496_s25  ;;  %p1503_p11 = scmp.lt.u32.totalorder %s1501_s24, %s1496_s25 }
  0x2b   : > { %p1505_p13 = scmp.lt.u32.totalorder %s1496_s25, %s2048_s27 }
  0x2c   : > { %p1499_p8 = pnand %p2066_p7, %p1497_p6  ;;  %p1504_p12 = por %p1503_p11, %p1502_p10 }
  0x2e   : > { %p1500_p9 = pneg %p1499_p8  ;;  %p1506_p1 = por %p1505_p13, %p1504_p12 }
  0x30   : > { %p1507_p3 = pnand %p1506_p1, %p1500_p9 }
  0x32   : > { %1510 = shalt.err (!%p1507_p3)
}
  0x33   : > { %s1511_s9 = scalar_lea.vmem %s2058_s20, 256  ;;  %s1906_s16 = smov [#allocation6]  }
  0x34   : > { %p1512_p6 = scmp.ne.s32.totalorder %s2058_s20, %s1511_s9  ;;  %s1516_s23 = sshll.u32 %s1906_s16, 4  ;;  %s1517_s23 = int_to_ptr.vmem [resolvable:$false] %s1516_s23 }
  0x35   : > { %s1518_s15 = scalar_lea.vmem %s1517_s23, 512  ;;  %p1519_p0 = scmp.lt.s32.totalorder %s2058_s20, %s1517_s23 }
  0x36   : > { %p1514_p8 = pnand %p1512_p6, %p2066_p7  ;;  %p1520_p5 = scmp.lt.s32.totalorder %s1518_s15, %s1511_s9 }
  0x38   : > { %p1515_p2 = pneg %p1514_p8  ;;  %p1521_p10 = por %p1520_p5, %p1519_p0 }
  0x3a   : > { %p1522_p11 = pnand %p1521_p10, %p1515_p2 }
  0x3c   : > { %1525 = shalt.err (!%p1522_p11)
}
  0x3d   : > { %s2608_s24 = smov 64   ;;  %s2610_s25 = smov 4  }
  0x3e   : > { %s2646_s9 = scalar_lea.sflag [#allocation7], %s2034_s21  ;;  %p497_p0 = scmp.lt.s32.totalorder %s1904_s19, 5 }
  0x3f   : > { %1356 = dma.hbm_to_vmem [thread:$0]  (!%p2052_p4), %s2048_s27, 256, %s2058_s20, %s2646_s9, %s2608_s24, %s2608_s24, %s2610_s25  }
  0x40   : > { %s1247_s29 = sshll.u32 %s2039_s22, 2  ;;  %s1248_s16 = sshll.u32 %s1896_s17, 6 }
  0x41   : > { %p2647_p2 = scmp.ge.s32.totalorder %s1904_s19, 1  ;;  %s2649_s3 = sld [smem:[#allocation37_spill]] }
  0x42   : > { %s391_s6 = scalar_lea.vmem [#allocation9], %s1247_s29  ;;  %s2613_s20 = sshll.u32 %s2039_s22, 3 }
  0x43   : > { %p2099_p5 = pnand %p2647_p2, %p497_p0  ;;  %s398_s4 = sshll.u32 %s391_s6, 4  ;;  %s2108_s4 = int_to_ptr.vmem [resolvable:$true] %s398_s4 }
  0x44   : > { %s2612_s27 = scalar_lea.sflag [#allocation10], %s2034_s21 }
  0x45   : > { %s2648_s23 = scalar_select %p2099_p5, 1, 0 }
  0x47   : > { %s2106_s8 = scalar_lea.hbm %s2649_s3, %s1248_s16  ;;  %s1531_s1 = scalar_lea.hbm %s2649_s3, 128 }
  0x48   : > { %s1526_s9 = scalar_lea.hbm %s2106_s8, 64  ;;  %p1532_p1 = scmp.lt.u32.totalorder %s2106_s8, %s2649_s3 }
  0x49   : > { %p1527_p9 = scmp.ne.s32.totalorder %s2106_s8, %s1526_s9  ;;  %p1533_p3 = scmp.lt.u32.totalorder %s1531_s1, %s1526_s9 }
  0x4a   : > { %p1535_p8 = scmp.lt.u32.totalorder %s1526_s9, %s2106_s8 }
  0x4b   : > { %p1529_p12 = pnand %p1527_p9, %p2066_p7  ;;  %p1534_p6 = por %p1533_p3, %p1532_p1 }
  0x4d   : > { %p1530_p13 = pneg %p1529_p12  ;;  %p1536_p10 = por %p1535_p8, %p1534_p6 }
  0x4f   : > { %p1537_p11 = pnand %p1536_p10, %p1530_p13 }
  0x51   : > { %1540 = shalt.err (!%p1537_p11)
}
  0x52   : > { %s1541_s6 = scalar_lea.vmem %s2108_s4, 64  ;;  %s1909_s24 = smov [#allocation9]  }
  0x53   : > { %p1542_p0 = scmp.ne.s32.totalorder %s2108_s4, %s1541_s6  ;;  %s1546_s25 = sshll.u32 %s1909_s24, 4  ;;  %s1547_s25 = int_to_ptr.vmem [resolvable:$false] %s1546_s25 }
  0x54   : > { %s1548_s29 = scalar_lea.vmem %s1547_s25, 128  ;;  %p1549_p12 = scmp.lt.s32.totalorder %s2108_s4, %s1547_s25 }
  0x55   : > { %p1544_p2 = pnand %p1542_p0, %p2066_p7  ;;  %p1550_p5 = scmp.lt.s32.totalorder %s1548_s29, %s1541_s6 }
  0x57   : > { %p1545_p9 = pneg %p1544_p2  ;;  %p1551_p1 = por %p1550_p5, %p1549_p12 }
  0x59   : > { %p1552_p3 = pnand %p1551_p1, %p1545_p9 }
  0x5b   : > { %1555 = shalt.err (!%p1552_p3)
}
  0x5c   : > { %1362 = dma.hbm_to_vmem [thread:$0]  (!%p2052_p4), %s2106_s8, 64, %s2108_s4, %s2612_s27  }
  0x5d   : > { %s2614_s9 = sshll.u32 %s1896_s17, 7  ;;  %s2650_s5 = sld [smem:[#allocation39_spill]] }
  0x5e   : > { %s427_s6 = scalar_lea.vmem [#allocation12], %s2613_s20  ;;  %s2616_s25 = scalar_lea.sflag [#allocation13], %s2034_s21 }
  0x5f   : > { %s434_s24 = sshll.u32 %s427_s6, 4  ;;  %s2145_s24 = int_to_ptr.vmem [resolvable:$true] %s434_s24 }
  0x63   : > { %s2141_s15 = scalar_lea.hbm %s2650_s5, %s2614_s9  ;;  %s1561_s1 = scalar_lea.hbm %s2650_s5, 256 }
  0x64   : > { %s1556_s29 = scalar_lea.hbm %s2141_s15, 128  ;;  %p1562_p8 = scmp.lt.u32.totalorder %s2141_s15, %s2650_s5 }
  0x65   : > { %p1557_p5 = scmp.ne.s32.totalorder %s2141_s15, %s1556_s29  ;;  %p1563_p10 = scmp.lt.u32.totalorder %s1561_s1, %s1556_s29 }
  0x66   : > { %p1565_p0 = scmp.lt.u32.totalorder %s1556_s29, %s2141_s15 }
  0x67   : > { %p1559_p13 = pnand %p1557_p5, %p2066_p7  ;;  %p1564_p11 = por %p1563_p10, %p1562_p8 }
  0x69   : > { %p1560_p6 = pneg %p1559_p13  ;;  %p1566_p2 = por %p1565_p0, %p1564_p11 }
  0x6b   : > { %p1567_p9 = pnand %p1566_p2, %p1560_p6 }
  0x6d   : > { %1570 = shalt.err (!%p1567_p9)
}
  0x6e   : > { %s1571_s6 = scalar_lea.vmem %s2145_s24, 128  ;;  %s1910_s4 = smov [#allocation12]  }
  0x6f   : > { %p1572_p12 = scmp.ne.s32.totalorder %s2145_s24, %s1571_s6  ;;  %s1576_s8 = sshll.u32 %s1910_s4, 4  ;;  %s1577_s8 = int_to_ptr.vmem [resolvable:$false] %s1576_s8 }
  0x70   : > { %s1578_s27 = scalar_lea.vmem %s1577_s8, 256  ;;  %p1579_p5 = scmp.lt.s32.totalorder %s2145_s24, %s1577_s8 }
  0x71   : > { %p1574_p1 = pnand %p1572_p12, %p2066_p7  ;;  %p1580_p13 = scmp.lt.s32.totalorder %s1578_s27, %s1571_s6 }
  0x73   : > { %p1575_p3 = pneg %p1574_p1  ;;  %p1581_p8 = por %p1580_p13, %p1579_p5 }
  0x75   : > { %p1582_p10 = pnand %p1581_p8, %p1575_p3 }
  0x77   : > { %1585 = shalt.err (!%p1582_p10)
}
  0x78   : > { %s2651_s29 = smov 4   ;;  %s2652_s1 = smov 64  }
  0x79   : > { %1368 = dma.hbm_to_vmem [thread:$0]  (!%p2052_p4), %s2141_s15, 128, %s2145_s24, %s2616_s25, %s2652_s1, %s2652_s1, %s2651_s29  }
  0x7a   : > { %s2653_s16 = sshll.u32 %s1896_s17, 8  ;;  %s2654_s7 = sld [smem:[#allocation41_spill]] }
  0x7b   : > { %s2655_s27 = sshll.u32 %s2039_s22, 4  ;;  %s2615_s3 = scalar_lea.sflag [#allocation16], %s2034_s21 }
  0x7c   : > { %s465_s20 = scalar_lea.vmem [#allocation15], %s2655_s27 }
  0x7d   : > { %s472_s9 = sshll.u32 %s465_s20, 4  ;;  %s2183_s9 = int_to_ptr.vmem [resolvable:$true] %s472_s9 }
  0x80   : > { %s2179_s8 = scalar_lea.hbm %s2654_s7, %s2653_s16  ;;  %s1591_s16 = scalar_lea.hbm %s2654_s7, 512 }
  0x81   : > { %s1586_s5 = scalar_lea.hbm %s2179_s8, 256  ;;  %p1592_p2 = scmp.lt.u32.totalorder %s2179_s8, %s2654_s7 }
  0x82   : > { %p1587_p6 = scmp.ne.s32.totalorder %s2179_s8, %s1586_s5  ;;  %p1593_p9 = scmp.lt.u32.totalorder %s1591_s16, %s1586_s5 }
  0x83   : > { %p1595_p1 = scmp.lt.u32.totalorder %s1586_s5, %s2179_s8 }
  0x84   : > { %p1589_p11 = pnand %p1587_p6, %p2066_p7  ;;  %p1594_p12 = por %p1593_p9, %p1592_p2 }
  0x86   : > { %p1590_p0 = pneg %p1589_p11  ;;  %p1596_p3 = por %p1595_p1, %p1594_p12 }
  0x88   : > { %p1597_p5 = pnand %p1596_p3, %p1590_p0 }
  0x8a   : > { %1600 = shalt.err (!%p1597_p5)
}
  0x8b   : > { %s1601_s20 = scalar_lea.vmem %s2183_s9, 256  ;;  %s1911_s27 = smov [#allocation15]  }
  0x8c   : > { %p1602_p13 = scmp.ne.s32.totalorder %s2183_s9, %s1601_s20  ;;  %s1606_s15 = sshll.u32 %s1911_s27, 4  ;;  %s1607_s15 = int_to_ptr.vmem [resolvable:$false] %s1606_s15 }
  0x8d   : > { %s1608_s24 = scalar_lea.vmem %s1607_s15, 512  ;;  %p1609_p6 = scmp.lt.s32.totalorder %s2183_s9, %s1607_s15 }
  0x8e   : > { %p1604_p8 = pnand %p1602_p13, %p2066_p7  ;;  %p1610_p11 = scmp.lt.s32.totalorder %s1608_s24, %s1601_s20 }
  0x90   : > { %p1605_p10 = pneg %p1604_p8  ;;  %p1611_p2 = por %p1610_p11, %p1609_p6 }
  0x92   : > { %p1612_p9 = pnand %p1611_p2, %p1605_p10 }
  0x94   : > { %1615 = shalt.err (!%p1612_p9)
}
  0x95   : > { %1374 = dma.hbm_to_vmem [thread:$0]  (!%p2052_p4), %s2179_s8, 256, %s2183_s9, %s2615_s3, %s2652_s1, %s2652_s1, %s2651_s29  }
  0x96   : > { %s2213_s5 = sadd.s32 4294967295, %s1904_s19   ;;  %s1236_s16 = sadd.s32 4294967294, %s1904_s19  }
  0x97   : > { %s46_s4 = sadd.s32 1, %s1896_s17  ;;  %s49_s6 = sadd.s32 1, %s1900_s18 }
  0x98   : > { %p47_p0 = scmp.ge.s32.totalorder %s46_s4, 2  ;;  %s56_s20 = sadd.s32 1, %s1884_s14 }
  0x99   : > { %p63_p12 = scmp.ne.s32.totalorder %s1884_s14, %s1880_s13  ;;  %p2657_p1 = scmp.eq.s32.totalorder %s1904_s19, 0 }
  0x9a   : > { %s2708_s4 = smov (%p47_p0, %s46_s4), 0  ;;  %s2710_s6 = smov (!%p47_p0, %s49_s6), %s1900_s18 }
  0x9b   : > { %2656 = sst [smem:[#allocation30_spill]] %s2708_s4  ;;  %p2229_p3 = por %p2657_p1, %p63_p12 }
  0x9c   : > { %p69_p5 = scmp.ne.s32.totalorder %s1880_s13, %s1876_s12  ;;  %p51_p13 = scmp.ge.s32.totalorder %s2710_s6, 2 }
  0x9d   : > { %p70_p8 = scmp.eq.s32.totalorder %s2213_s5, 0  ;;  %s79_s29 = ssub.s32 %s1896_s17, %s2708_s4 }
  0x9e   : > { %p95_p10 = scmp.ne.s32.totalorder %s1868_s10, %s1864_s30  ;;  %s2712_s6 = smov (%p51_p13, %s2710_s6), 0 }
  0x9f   : > { %2659 = sst [smem:[#allocation31_spill]] %s2712_s6  ;;  %p2245_p6 = por %p70_p8, %p69_p5 }
  0xa0   : > { %p80_p11 = scmp.eq.s32.totalorder %s79_s29, 0  ;;  %s53_s8 = ssub.s32 %s1900_s18, %s2712_s6 }
  0xa1   : > { %s2660_s1 = scalar_select %p2245_p6, 1, 0 }
  0xa2   : > { %p2251_p2 = por %p95_p10, %p70_p8  ;;  %p54_p9 = scmp.eq.s32.totalorder %s53_s8, 0 }
  0xa3   : > { %p301_p0 = scmp.eq.s32.totalorder %s2213_s5, 3  ;;  %s2662_s30 = sadd.s32 1, %s1872_s11 }
  0xa4   : > { %s2661_s27 = scalar_select %p2251_p2, 1, 0 }
  0xa5   : > { %s2259_s15 = scalar_select %p80_p11, %s1872_s11, %s2662_s30  }
  0xa6   : > { %s2262_s24 = scalar_select %p54_p9, %s1884_s14, %s56_s20  }
  0xa7   : > { %2663 = sst [smem:[#allocation32_spill]] %s2259_s15  ;;  %p2267_p1 = por %p301_p0, %p63_p12 }
  0xa8   : > { %2664 = sst [smem:[#allocation33_spill]] %s2262_s24  ;;  %p307_p13 = scmp.eq.s32.totalorder %s1236_s16, 3 }
  0xa9   : > { %s2665_s3 = scalar_select %p2267_p1, 1, 0 }
  0xaa   : > { %s327_s29 = sand.u32 1, %s1884_s14   ;;  %s1240_s25 = sshll.u32 %s1900_s18, 7 }
  0xab   : > { %p2276_p8 = por %p307_p13, %p69_p5  ;;  %s1239_s8 = sshll.u32 %s327_s29, 3 }
  0xac   : > { %s2667_s0 = sld [smem:[#allocation34_spill]]  ;;  %p2668_p10 = scmp.lt.s32.totalorder %s1904_s19, 4 }
  0xad   : > { %s2666_s7 = scalar_select %p2276_p8, 1, 0 }
  0xae   : > { %p2289_p12 = pnand %p2668_p10, %p2229_p3  ;;  %s331_s20 = scalar_lea.vmem [#allocation3], %s1239_s8 }
  0xaf   : > { %s338_s18 = sshll.u32 %s331_s20, 4  ;;  %s1244_s24 = sshll.u32 %s2039_s22, 5  ;;  %s2294_s18 = int_to_ptr.vmem [resolvable:$true] %s338_s18 }
  0xb0   : > { %s328_s4 = scalar_lea.sflag [#allocation4], %s327_s29  ;;  %p1618_p11 = pneg %p2289_p12 }
  0xb2   : > { %s2283_s30 = scalar_lea.hbm %s2667_s0, %s1240_s25  ;;  %s1621_s14 = scalar_lea.hbm %s2667_s0, 256 }
  0xb3   : > { %s1616_s25 = scalar_lea.hbm %s2283_s30, 128  ;;  %p1622_p3 = scmp.lt.u32.totalorder %s2283_s30, %s2667_s0 }
  0xb4   : > { %p1617_p5 = scmp.ne.s32.totalorder %s2283_s30, %s1616_s25  ;;  %p1623_p13 = scmp.lt.u32.totalorder %s1621_s14, %s1616_s25 }
  0xb5   : > { %p1625_p8 = scmp.lt.u32.totalorder %s1616_s25, %s2283_s30 }
  0xb6   : > { %p1619_p9 = pnand %p1618_p11, %p1617_p5  ;;  %p1624_p10 = por %p1623_p13, %p1622_p3 }
  0xb8   : > { %p1620_p0 = pneg %p1619_p9  ;;  %p1626_p1 = por %p1625_p8, %p1624_p10 }
  0xba   : > { %p1627_p2 = pnand %p1626_p1, %p1620_p0 }
  0xbc   : > { %1630 = shalt.err (!%p1627_p2)
}
  0xbd   : > { %s1631_s29 = scalar_lea.vmem %s2294_s18, 128  ;;  %s1912_s8 = smov [#allocation3]  }
  0xbe   : > { %p1632_p5 = scmp.ne.s32.totalorder %s2294_s18, %s1631_s29  ;;  %s1636_s20 = sshll.u32 %s1912_s8, 4  ;;  %s1637_s20 = int_to_ptr.vmem [resolvable:$false] %s1636_s20 }
  0xbf   : > { %s1638_s11 = scalar_lea.vmem %s1637_s20, 256  ;;  %p1639_p4 = scmp.lt.s32.totalorder %s2294_s18, %s1637_s20 }
  0xc0   : > { %p1634_p9 = pnand %p1632_p5, %p1618_p11  ;;  %p1640_p3 = scmp.lt.s32.totalorder %s1638_s11, %s1631_s29 }
  0xc2   : > { %p1635_p6 = pneg %p1634_p9  ;;  %p1641_p13 = por %p1640_p3, %p1639_p4 }
  0xc4   : > { %p1642_p8 = pnand %p1641_p13, %p1635_p6 }
  0xc6   : > { %1645 = shalt.err (!%p1642_p8)
}
  0xc7   : > { %1353 = dma.hbm_to_vmem [thread:$0]  (!%p2289_p12), %s2283_s30, 128, %s2294_s18, %s328_s4  }
  0xc8   : > { %s1287_s14 = sshll.u32 %s1896_s17, 9  ;;  %s2670_s2 = sld [smem:[#allocation36_spill]] }
  0xc9   : > { %s370_s9 = scalar_lea.vmem [#allocation8], %s1244_s24 }
  0xca   : > { %s377_s29 = sshll.u32 %s370_s9, 4  ;;  %s2329_s29 = int_to_ptr.vmem [resolvable:$true] %s377_s29 }
  0xce   : > { %s2325_s6 = scalar_lea.hbm %s2670_s2, %s1287_s14  ;;  %s1651_s4 = scalar_lea.hbm %s2670_s2, 1024 }
  0xcf   : > { %s1646_s16 = scalar_lea.hbm %s2325_s6, 512  ;;  %p1652_p1 = scmp.lt.u32.totalorder %s2325_s6, %s2670_s2 }
  0xd0   : > { %p1647_p4 = scmp.ne.s32.totalorder %s2325_s6, %s1646_s16  ;;  %p1653_p12 = scmp.lt.u32.totalorder %s1651_s4, %s1646_s16 }
  0xd1   : > { %p1655_p0 = scmp.lt.u32.totalorder %s1646_s16, %s2325_s6 }
  0xd2   : > { %p1649_p6 = pnand %p1647_p4, %p2066_p7  ;;  %p1654_p11 = por %p1653_p12, %p1652_p1 }
  0xd4   : > { %p1650_p2 = pneg %p1649_p6  ;;  %p1656_p10 = por %p1655_p0, %p1654_p11 }
  0xd6   : > { %p1657_p5 = pnand %p1656_p10, %p1650_p2 }
  0xd8   : > { %1660 = shalt.err (!%p1657_p5)
}
  0xd9   : > { %s1661_s24 = scalar_lea.vmem %s2329_s29, 512  ;;  %s1913_s11 = smov [#allocation8]  }
  0xda   : > { %p1662_p9 = scmp.ne.s32.totalorder %s2329_s29, %s1661_s24  ;;  %s1666_s14 = sshll.u32 %s1913_s11, 4  ;;  %s1667_s14 = int_to_ptr.vmem [resolvable:$false] %s1666_s14 }
  0xdb   : > { %s1668_s15 = scalar_lea.vmem %s1667_s14, 1024  ;;  %p1669_p8 = scmp.lt.s32.totalorder %s2329_s29, %s1667_s14 }
  0xdc   : > { %p1664_p3 = pnand %p1662_p9, %p2066_p7  ;;  %p1670_p4 = scmp.lt.s32.totalorder %s1668_s15, %s1661_s24 }
  0xde   : > { %p1665_p13 = pneg %p1664_p3  ;;  %p1671_p6 = por %p1670_p4, %p1669_p8 }
  0xe0   : > { %p1672_p1 = pnand %p1671_p6, %p1665_p13 }
  0xe2   : > { %1675 = shalt.err (!%p1672_p1)
}
  0xe3   : > { %s1914_s25 = smov 128   ;;  %s1915_s9 = smov 8  }
  0xe4   : > { %p2671_p2 = scmp.ne.s32.totalorder %s2644_s28, 0  ;;  %s2672_s16 = scalar_lea.sflag [#allocation7], %s2034_s21 }
  0xe5   : > { %s2673_s18 = sshll.u32 %s1896_s17, 7  ;;  %s2674_s8 = sld [smem:[#allocation38_spill]] }
  0xe6   : > { %1359 = dma.hbm_to_vmem [thread:$0]  (!%p2671_p2), %s2325_s6, 512, %s2329_s29, %s2672_s16, %s1914_s25, %s1914_s25, %s1915_s9  }
  0xe7   : > { %s2675_s24 = sshll.u32 %s2039_s22, 3 }
  0xe8   : > { %s409_s11 = scalar_lea.vmem [#allocation11], %s2675_s24 }
  0xe9   : > { %s416_s14 = sshll.u32 %s409_s11, 4  ;;  %s417_s14 = int_to_ptr.vmem [resolvable:$true] %s416_s14 }
  0xeb   : > { %s2359_s20 = scalar_lea.hbm %s2674_s8, %s2673_s18  ;;  %s1681_s25 = scalar_lea.hbm %s2674_s8, 256 }
  0xec   : > { %s1676_s15 = scalar_lea.hbm %s2359_s20, 128  ;;  %p1682_p10 = scmp.lt.u32.totalorder %s2359_s20, %s2674_s8 }
  0xed   : > { %p1677_p12 = scmp.ne.s32.totalorder %s2359_s20, %s1676_s15  ;;  %p1683_p5 = scmp.lt.u32.totalorder %s1681_s25, %s1676_s15 }
  0xee   : > { %p1685_p3 = scmp.lt.u32.totalorder %s1676_s15, %s2359_s20 }
  0xef   : > { %p1679_p11 = pnand %p1677_p12, %p2066_p7  ;;  %p1684_p9 = por %p1683_p5, %p1682_p10 }
  0xf1   : > { %p1680_p0 = pneg %p1679_p11  ;;  %p1686_p13 = por %p1685_p3, %p1684_p9 }
  0xf3   : > { %p1687_p8 = pnand %p1686_p13, %p1680_p0 }
  0xf5   : > { %1690 = shalt.err (!%p1687_p8)
}
  0xf6   : > { %s1691_s18 = scalar_lea.vmem %s417_s14, 128  ;;  %s1916_s30 = smov [#allocation11]  }
  0xf7   : > { %p1692_p4 = scmp.ne.s32.totalorder %s417_s14, %s1691_s18  ;;  %s1696_s4 = sshll.u32 %s1916_s30, 4  ;;  %s1697_s4 = int_to_ptr.vmem [resolvable:$false] %s1696_s4 }
  0xf8   : > { %s1698_s24 = scalar_lea.vmem %s1697_s4, 256  ;;  %p1699_p12 = scmp.lt.s32.totalorder %s417_s14, %s1697_s4 }
  0xf9   : > { %p1694_p6 = pnand %p1692_p4, %p2066_p7  ;;  %p1700_p11 = scmp.lt.s32.totalorder %s1698_s24, %s1691_s18 }
  0xfb   : > { %p1695_p1 = pneg %p1694_p6  ;;  %p1701_p2 = por %p1700_p11, %p1699_p12 }
  0xfd   : > { %p1702_p5 = pnand %p1701_p2, %p1695_p1 }
  0xff   : > { %1705 = shalt.err (!%p1702_p5)
}
 0x100   : > { %p2676_p10 = scmp.ne.s32.totalorder %s2644_s28, 0  ;;  %s2677_s11 = scalar_lea.sflag [#allocation10], %s2034_s21 }
 0x101   : > { %s1254_s15 = sshll.u32 %s1896_s17, 4  ;;  %s447_s6 = scalar_lea.vmem [#allocation14], %s2039_s22 }
 0x102   : > { %1365 = dma.hbm_to_vmem [thread:$0]  (!%p2676_p10), %s2359_s20, 128, %s417_s14, %s2677_s11  }
 0x103   : > { %s454_s29 = sshll.u32 %s447_s6, 4  ;;  %s2678_s16 = sld [smem:[#allocation40_spill]]  ;;  %s455_s29 = int_to_ptr.vmem [resolvable:$true] %s454_s29 }
 0x109   : > { %s2679_s4 = smov %s2678_s16  ;;  %s452_s18 = scalar_lea.hbm %s2678_s16, %s1254_s15 }
 0x10a   : > { %s1706_s30 = scalar_lea.hbm %s452_s18, 16  ;;  %s1711_s2 = scalar_lea.hbm %s2679_s4, 32 }
 0x10b   : > { %p1707_p2 = scmp.ne.s32.totalorder %s452_s18, %s1706_s30  ;;  %p1712_p3 = scmp.lt.u32.totalorder %s452_s18, %s2679_s4 }
 0x10c   : > { %p1713_p13 = scmp.lt.u32.totalorder %s1711_s2, %s1706_s30  ;;  %p1715_p4 = scmp.lt.u32.totalorder %s1706_s30, %s452_s18 }
 0x10d   : > { %p1709_p0 = pnand %p1707_p2, %p2066_p7 }
 0x10e   : > { %p1714_p8 = por %p1713_p13, %p1712_p3 }
 0x10f   : > { %p1710_p9 = pneg %p1709_p0 }
 0x110   : > { %p1716_p6 = por %p1715_p4, %p1714_p8 }
 0x112   : > { %p1717_p1 = pnand %p1716_p6, %p1710_p9 }
 0x114   : > { %1720 = shalt.err (!%p1717_p1)
}
 0x115   : > { %s1721_s14 = scalar_lea.vmem %s455_s29, 16  ;;  %s1917_s11 = smov [#allocation14]  }
 0x116   : > { %p1722_p12 = scmp.ne.s32.totalorder %s455_s29, %s1721_s14  ;;  %s1726_s6 = sshll.u32 %s1917_s11, 4  ;;  %s1727_s6 = int_to_ptr.vmem [resolvable:$false] %s1726_s6 }
 0x117   : > { %s1728_s0 = scalar_lea.vmem %s1727_s6, 32  ;;  %p1729_p2 = scmp.lt.s32.totalorder %s455_s29, %s1727_s6 }
 0x118   : > { %p1724_p11 = pnand %p1722_p12, %p2066_p7  ;;  %p1730_p0 = scmp.lt.s32.totalorder %s1728_s0, %s1721_s14 }
 0x11a   : > { %p1725_p5 = pneg %p1724_p11  ;;  %p1731_p10 = por %p1730_p0, %p1729_p2 }
 0x11c   : > { %p1732_p3 = pnand %p1731_p10, %p1725_p5 }
 0x11e   : > { %1735 = shalt.err (!%p1732_p3)
}
 0x11f   : > { %p2680_p13 = scmp.ne.s32.totalorder %s2644_s28, 0  ;;  %s2681_s2 = scalar_lea.sflag [#allocation13], %s2034_s21 }
 0x120   : > { %s2682_s9 = sld [smem:[#allocation42_spill]]  ;;  %s485_s30 = scalar_lea.vmem [#allocation17], %s2039_s22 }
 0x121   : > { %1371 = dma.hbm_to_vmem [thread:$0]  (!%p2680_p13), %s452_s18, 16, %s455_s29, %s2681_s2  }
 0x122   : > { %s492_s24 = sshll.u32 %s485_s30, 4  ;;  %s493_s24 = int_to_ptr.vmem [resolvable:$true] %s492_s24 }
 0x126   : > { %s2408_s16 = scalar_lea.hbm %s2682_s9, %s1254_s15  ;;  %s1741_s18 = scalar_lea.hbm %s2682_s9, 32 }
 0x127   : > { %s1736_s20 = scalar_lea.hbm %s2408_s16, 16  ;;  %p1742_p4 = scmp.lt.u32.totalorder %s2408_s16, %s2682_s9 }
 0x128   : > { %p1737_p10 = scmp.ne.s32.totalorder %s2408_s16, %s1736_s20  ;;  %p1743_p6 = scmp.lt.u32.totalorder %s1741_s18, %s1736_s20 }
 0x129   : > { %p1745_p12 = scmp.lt.u32.totalorder %s1736_s20, %s2408_s16 }
 0x12a   : > { %p1739_p9 = pnand %p1737_p10, %p2066_p7  ;;  %p1744_p1 = por %p1743_p6, %p1742_p4 }
 0x12c   : > { %p1740_p8 = pneg %p1739_p9  ;;  %p1746_p11 = por %p1745_p12, %p1744_p1 }
 0x12e   : > { %p1747_p5 = pnand %p1746_p11, %p1740_p8 }
 0x130   : > { %1750 = shalt.err (!%p1747_p5)
}
 0x131   : > { %s1751_s22 = scalar_lea.vmem %s493_s24, 16  ;;  %s1918_s15 = smov [#allocation17]  }
 0x132   : > { %p1752_p2 = scmp.ne.s32.totalorder %s493_s24, %s1751_s22  ;;  %s1756_s0 = sshll.u32 %s1918_s15, 4  ;;  %s1757_s0 = int_to_ptr.vmem [resolvable:$false] %s1756_s0 }
 0x133   : > { %s1758_s2 = scalar_lea.vmem %s1757_s0, 32  ;;  %p1759_p10 = scmp.lt.s32.totalorder %s493_s24, %s1757_s0 }
 0x134   : > { %p1754_p0 = pnand %p1752_p2, %p2066_p7  ;;  %p1760_p9 = scmp.lt.s32.totalorder %s1758_s2, %s1751_s22 }
 0x136   : > { %p1755_p3 = pneg %p1754_p0  ;;  %p1761_p13 = por %p1760_p9, %p1759_p10 }
 0x138   : > { %p1762_p4 = pnand %p1761_p13, %p1755_p3 }
 0x13a   : > { %1765 = shalt.err (!%p1762_p4)
}
 0x13b   : > { %p2683_p6 = scmp.ne.s32.totalorder %s2644_s28, 0  ;;  %s2684_s8 = scalar_lea.sflag [#allocation16], %s2034_s21 }
 0x13c   : > { %p2685_p8 = scmp.ne.s32.totalorder %s2648_s23, 0 }
 0x13d   : > { %1377 = dma.hbm_to_vmem [thread:$0]  (!%p2683_p6), %s2408_s16, 16, %s493_s24, %s2684_s8  }
 0x13e   : > { %501 = sbr.rel (%p2685_p8) target bundleno = 1318 (0x526), region = 56  ;;  %s2433_s26 = sand.u32 (!%p2685_p8), 1, %s1880_s13  }
 0x13f   : > { %s1260_s25 = sshll.u32 (!%p2685_p8), %s2433_s26, 3  ;;  %s504_s30 = scalar_lea.sflag (!%p2685_p8), [#allocation4], %s2433_s26 }
 0x140   : > { %s2439_s20 = scalar_lea.vmem (!%p2685_p8), [#allocation3], %s1260_s25  ;;  %p2686_p7 = scmp.ne.s32.totalorder (!%p2685_p8), %s2660_s1, 0 }
 0x145   : > { %1839 = dma.done.wait (%p2686_p7), %s504_s30, 128  }
 0x146   : > { %1841 = vsyncadd (%p2686_p7), %s504_s30, 4294967168  ;;  %s512_s21 = sand.u32 1, %s2213_s5   ;;  %s2447_s28 = sand.u32 1, %s1868_s10  }
 0x147   : > { %s1261_s23 = sshll.u32 %s2447_s28, 4  ;;  %s513_s16 = scalar_lea.sflag [#allocation7], %s512_s21 }
 0x148   : > { %s2450_s24 = scalar_lea.vmem [#allocation6], %s1261_s23  ;;  %p2687_p13 = scmp.ne.s32.totalorder %s2661_s27, 0 }
 0x14a   : > { %1843 = dma.done.wait (%p2687_p13), %s513_s16, 768  }
 0x14b   : > { %1845 = vsyncadd (%p2687_p13), %s513_s16, 4294966528  ;;  %s1262_s1 = sshll.u32 %s2447_s28, 5  ;;  %s1263_s14 = sshll.u32 %s2447_s28, 2 }
 0x14c   : > { %s2458_s29 = scalar_lea.vmem [#allocation8], %s1262_s1  ;;  %s531_s5 = scalar_lea.sflag [#allocation10], %s512_s21 }
 0x14d   : > { %s2460_s18 = scalar_lea.vmem [#allocation9], %s1263_s14 }
 0x14e   : > { %1847 = dma.done.wait (%p2687_p13), %s531_s5, 192  }
 0x14f   : > { %1849 = vsyncadd (%p2687_p13), %s531_s5, 4294967104  ;;  %s1264_s11 = sshll.u32 %s2447_s28, 3  ;;  %s549_s22 = scalar_lea.sflag [#allocation13], %s512_s21 }
 0x150   : > { %s2467_s6 = scalar_lea.vmem [#allocation11], %s1264_s11  ;;  %s2469_s15 = scalar_lea.vmem [#allocation12], %s1264_s11 }
 0x151   : > { %1851 = dma.done.wait (%p2687_p13), %s549_s22, 144  }
 0x152   : > { %1853 = vsyncadd (%p2687_p13), %s549_s22, 4294967152  ;;  %s560_s0 = scalar_lea.vmem [#allocation14], %s2447_s28  ;;  %s566_s2 = scalar_lea.sflag [#allocation16], %s512_s21 }
 0x153   : > { %s2476_s8 = scalar_lea.vmem [#allocation15], %s1261_s23 }
 0x154   : > { %1855 = dma.done.wait (%p2687_p13), %s566_s2, 272  }
 0x155   : > { %1857 = vsyncadd (%p2687_p13), %s566_s2, 4294967024  ;;  %s577_s30 = scalar_lea.vmem [#allocation17], %s2447_s28  ;;  %s2485_s16 = scalar_lea.vmem [#allocation18], %s1260_s25 }
 0x156   : > { %s2688_s1 = sld [smem:[#allocation27_spill]] }
 0x15c   : > { %p1268_p1 = scmp.ne.s32.totalorder %s2688_s1, 0 }
 0x15d   : > { %v655_v0 = vld [vmem:[%s2439_s20] sm:$0xff] (!%p1268_p1)  ;;  %vm656_vm0 = vcmask (!%p1268_p1), 130048  }
 0x15e   : > { %654 = sbr.rel (%p1268_p1) target bundleno = 357 (0x165), region = 96  ;;  %657 = vst.msk [vmem:[#allocation2] sm:$0xff] (!%p1268_p1), %vm656_vm0, %v655_v0 }
 0x165 PF: > { %v2489_v1 = vld [vmem:[#allocation2] sm:$0xff]  ;;  %vm715_vm1 = vcmask 1043456   ;;  %v1481_v3 = vld [vmem:[%s2450_s24] sm:$0xff]   ;;  %vm708_vm2 = vcmask 64512   ;;  %v1919_v8 = vmov 0   ;;  %v665_v10 = vld [vmem:[%s2458_s29 + $0x18] sm:$0xff] }
 0x166   : > { %v677_v2 = vpack.c.bf16 %v2489_v1, %v2489_v1  ;;  %v662_v4 = vld [vmem:[%s2458_s29] sm:$0xff]  ;;  %1303 = vmatprep.mubr.msk.bf16.mxu0 %vm708_vm2, %v1481_v3  ;;  %v1482_v6 = vld [vmem:[%s2450_s24 + $0x8] sm:$0xff]   ;;  %v664_v7 = vld [vmem:[%s2458_s29 + $0x10] sm:$0xff]  ;;  %1479 = vset.pattern.permute.xlu0 %v1919_v8  ;;  %v1920_v12 = vmov 0.0   ;;  %vm1921_vm3 = vmmov 0   ;;  %vm795_vm4 = vcmask 261120  }
 0x167   : > { %680 = vperm.xlu0 %1479, %v662_v4   ;;  %1480 = vset.pattern.permute.xlu1 %v1919_v8  ;;  %v663_v9 = vld [vmem:[%s2458_s29 + $0x8] sm:$0xff]  ;;  %v666_v47 = vld [vmem:[%s2460_s18] sm:$0xf]  ;;  %vm840_vm5 = vcmask 130048   ;;  %s2689_s27 = sld [smem:[#allocation27_spill]] }
 0x168   : > { %1329 = vmatprep.subr.msk.bf16.mxu0 %vm715_vm1, %v677_v2  ;;  %v717_v5 = vsel %vm715_vm1, %v677_v2, 0  ;;  %690 = vperm.xlu1 %1480, %v664_v7   ;;  %v667_v11 = vld [vmem:[%s2467_s6] sm:$0xff]  ;;  %v1483_v48 = vld [vmem:[%s2469_s15] sm:$0xff]  }
 0x169   : > { %1302 = vmatpush3.bf16.msra.mxu0 %v717_v5  ;;  %1307 = vmatprep.subr.bf16.mxu1 %v1920_v12  ;;  %v1484_v58 = vld [vmem:[%s2476_s8] sm:$0xff]   ;;  %v1485_v59 = vld [vmem:[%s2476_s8 + $0x8] sm:$0xff]  }
 0x16a   : > { %1315 = vmatprep.subr.bf16.mxu0 %v1920_v12  ;;  %1311 = vmatprep.mubr.msk.bf16.mxu1 %vm1921_vm3, %v1920_v12  ;;  %v1274_v60 = vld [vmem:[%s560_s0] ss:$0 sm:$0xff] }
 0x16b   : > { %685 = vperm.xlu0 %1479, %v663_v9   ;;  %v1277_v8 = vld [vmem:[%s577_s30] ss:$0 sm:$0xff] }
 0x16c   : > { %1304 = vmatmul.mubr.msk.bf16.vlgmr.msra.gmra.mrb[0].mxu0 %vm708_vm2, %v1482_v6  ;;  %695 = vperm.xlu1 %1480, %v665_v10  }
 0x16d   : > { %1317 = vmatprep.mubr.msk.bf16.mxu0 %vm1921_vm3, %v1920_v12  ;;  %1316 = vmatpush3.bf16.msra.mxu0 %v1483_v48  ;;  %p1281_p12 = scmp.ne.s32.totalorder %s2689_s27, 1 }
 0x16f   : > { %792 = vperm.xlu0 %1479, %v667_v11  }
 0x1e6   : > { %v681_v14 = vpop.permute.xlu0 %680 }
 0x1e7   : > { %v691_v13 = vpop.permute.xlu1 %690 }
 0x1ea   : > { %v686_v21 = vpop.permute.xlu0 %685 }
 0x1eb   : > { %v696_v16 = vpop.permute.xlu1 %695 }
 0x1ee   : > { %v793_v49 = vpop.permute.xlu0 %792 }
 0x23f   : > { %v1305_v15 = vpop.f32.mrb[0].mxu0 }
 0x240   : > { %v762_v17 = vadd.f32 %v1305_v15, %v691_v13  ;;  %v753_v18 = vpop.f32.mrb[1].mxu0 }
 0x241   : > { %v754_v19 = vadd.f32 %v753_v18, %v681_v14  ;;  %v1306_v20 = vpop.f32.mrb[2].mxu0 }
 0x242   : > { %v774_v22 = vmul.f32 0.70710677, %v762_v17  ;;  %v765_v23 = vadd.f32 %v1306_v20, %v696_v16  ;;  %v756_v24 = vpop.f32.mrb[3].mxu0  ;;  %v770_v35 = vmul.f32 0.5, %v762_v17 }
 0x243   : > { %v772_v25 = vmul.f32 0.70710677, %v754_v19  ;;  %v757_v26 = vadd.f32 %v756_v24, %v686_v21  ;;  %v768_v38 = vmul.f32 0.5, %v754_v19 }
 0x244   : > { %1486 = verf.f32 %v774_v22  ;;  %v775_v27 = vmul.f32 0.70710677, %v765_v23  ;;  %v771_v36 = vmul.f32 0.5, %v765_v23 }
 0x245   : > { %1488 = verf.f32 %v772_v25  ;;  %v773_v28 = vmul.f32 0.70710677, %v757_v26  ;;  %v769_v39 = vmul.f32 0.5, %v757_v26 }
 0x246   : > { %1490 = verf.f32 %v775_v27 }
 0x247   : > { %1492 = verf.f32 %v773_v28 }
 0x24e   : > { %v1487_v29 = vpop.eup %1486 }
 0x24f   : > { %v1489_v30 = vpop.eup %1488  ;;  %v782_v31 = vadd.f32 1.0, %v1487_v29 }
 0x250   : > { %v1491_v32 = vpop.eup %1490  ;;  %v780_v33 = vadd.f32 1.0, %v1489_v30 }
 0x251   : > { %v1493_v34 = vpop.eup %1492  ;;  %v783_v37 = vadd.f32 1.0, %v1491_v32  ;;  %v786_v41 = vmul.f32 %v782_v31, %v770_v35 }
 0x252   : > { %v781_v40 = vadd.f32 1.0, %v1493_v34  ;;  %v784_v43 = vmul.f32 %v780_v33, %v768_v38 }
 0x253   : > { %v787_v42 = vmul.f32 %v783_v37, %v771_v36 }
 0x254   : > { %v785_v44 = vmul.f32 %v781_v40, %v769_v39 }
 0x255   : > { %v789_v45 = vpack.c.bf16 %v787_v42, %v786_v41 }
 0x256   : > { %v788_v46 = vpack.c.bf16 %v785_v44, %v784_v43 }
 0x258   : > { %1308 = vmatpush3.bf16.msra.mxu1 %v788_v46 }
 0x259   : > { %1309 = vmatprep.subr.bf16.mxu1 %v1920_v12 }
 0x25c   : > { %1310 = vmatpush3.bf16.msra.mxu1 %v789_v45 }
 0x25d   : > { %1321 = vmatprep.subr.bf16.mxu1 %v1920_v12 }
 0x25f   : > { %1312 = vmatmul.mubr.msk.bf16.vlgmr.msra.gmra.mrb[0].mxu1 %vm795_vm4, %v666_v47 }
 0x260   : > { %1325 = vmatprep.mubr.msk.bf16.mxu1 %vm1921_vm3, %v1920_v12  ;;  %1322 = vmatpush3.bf16.msra.mxu1 %v1484_v58 }
 0x261   : > { %1323 = vmatprep.subr.bf16.mxu1 %v1920_v12 }
 0x264   : > { %1324 = vmatpush3.bf16.msra.mxu1 %v1485_v59 }
 0x332   : > { %v833_v50 = vpop.f32.mrb[0].mxu1 }
 0x333   : > { %v834_v51 = vadd.f32 %v833_v50, %v793_v49  ;;  %v1313_v52 = vpop.f32.mrb[1].mxu1 }
 0x334   : > { %v836_v53 = vpop.f32.mrb[2].mxu1 }
 0x335   : > { %v839_v54 = vadd.f32 %v834_v51, %v2489_v1  ;;  %v1314_v55 = vpop.f32.mrb[3].mxu1 }
 0x337   : > { %841 = vst.msk [vmem:[#allocation2] sm:$0xff] %vm840_vm5, %v839_v54 }
 0x33e   : > { %v842_v56 = vld [vmem:[#allocation2] sm:$0xff] }
 0x33f   : > { %v843_v57 = vpack.c.bf16 %v842_v56, %v842_v56 }
 0x341   : > { %1318 = vmatmul.mubr.msk.bf16.vlgmr.msra.gmra.mrb[4].mxu0 %vm840_vm5, %v843_v57 }
 0x414   : > { %v893_v61 = vpop.f32.mrb[4].mxu0 }
 0x415   : > { %v894_v62 = vadd.f32 %v1274_v60, %v893_v61  ;;  %v1319_v63 = vpop.f32.mrb[5].mxu0 }
 0x416   : > { %v896_v0 = vpop.f32.mrb[6].mxu0 }
 0x417   : > { %v900_v1 = vmul.f32 0.70710677, %v894_v62  ;;  %v1320_v2 = vpop.f32.mrb[7].mxu0  ;;  %v899_v4 = vmul.f32 0.5, %v894_v62 }
 0x419   : > { %1494 = verf.f32 %v900_v1 }
 0x423   : > { %v1495_v3 = vpop.eup %1494 }
 0x424   : > { %v902_v5 = vadd.f32 1.0, %v1495_v3 }
 0x426   : > { %v903_v6 = vmul.f32 %v902_v5, %v899_v4 }
 0x428   : > { %v904_v7 = vpack.c.bf16 %v903_v6, %v903_v6 }
 0x42a   : > { %1326 = vmatmul.mubr.msk.bf16.vlgmr.msra.gmra.mrb[4].mxu1 %vm795_vm4, %v904_v7 }
 0x4fc   : > { %971 = sbr.rel (%p1281_p12) target bundleno = 1291 (0x50b), region = 100 }
 0x4fd   : > { %v960_v9 = vpop.f32.mrb[4].mxu1 }
 0x4fe   : > { %v961_v10 = vadd.f32 %v1277_v8, %v960_v9  ;;  %v1327_v11 = vpop.f32.mrb[5].mxu1 }
 0x4ff   : > { %v963_v12 = vpop.f32.mrb[6].mxu1 }
 0x500   : > { %v966_v13 = vadd.f32 %v961_v10, %v842_v56  ;;  %v1328_v14 = vpop.f32.mrb[7].mxu1 }
 0x502   : > { %967 = vst.msk [vmem:[#allocation2] sm:$0xff] %vm840_vm5, %v966_v13 }
 0x509   : > { %v972_v15 = vld [vmem:[#allocation2] sm:$0xff] }
 0x50a   : > { %973 = vst.msk [vmem:[%s2485_s16] sm:$0xff] %vm840_vm5, %v972_v15 }
 0x50b PF: > { %s2690_s25 = sld [smem:[#allocation28_spill]]  ;;  %s2691_s23 = sld [smem:[#allocation43_spill]] }
 0x50c   : > { %s988_s14 = sshll.u32 %s2485_s16, 4  ;;  %s975_s29 = scalar_lea.sflag [#allocation5], %s2433_s26  ;;  %s989_s14 = int_to_ptr.vmem [resolvable:$true] %s988_s14 }
 0x50d   : > { %s1766_s5 = scalar_lea.vmem %s989_s14, 128  ;;  %p2692_p5 = scmp.ne.s32.totalorder %s2665_s3, 0 }
 0x50e   : > { %p1767_p11 = scmp.ne.s32.totalorder %s989_s14, %s1766_s5  ;;  %s1922_s18 = smov [#allocation18]  }
 0x50f   : > { %s1770_s11 = sshll.u32 %s1922_s18, 4  ;;  %s1771_s11 = int_to_ptr.vmem [resolvable:$false] %s1770_s11 }
 0x510   : > { %p1768_p2 = pnand %p1767_p11, %p2692_p5  ;;  %s1772_s6 = scalar_lea.vmem %s1771_s11, 256 }
 0x511   : > { %s1283_s20 = sshll.u32 %s2690_s25, 7  ;;  %p1773_p3 = scmp.lt.s32.totalorder %s989_s14, %s1771_s11 }
 0x512   : > { %s2532_s24 = scalar_lea.hbm %s2691_s23, %s1283_s20  ;;  %p1769_p0 = pneg %p1768_p2 }
 0x513   : > { %p1774_p10 = scmp.lt.s32.totalorder %s1772_s6, %s1766_s5 }
 0x515   : > { %p1775_p9 = por %p1774_p10, %p1773_p3 }
 0x517   : > { %p1776_p4 = pnand %p1775_p9, %p1769_p0 }
 0x519   : > { %1779 = shalt.err (!%p1776_p4)
}
 0x51a   : > { %s1780_s26 = scalar_lea.hbm %s2532_s24, 128  ;;  %s1784_s0 = scalar_lea.hbm %s2691_s23, 256 }
 0x51b   : > { %p1781_p6 = scmp.ne.s32.totalorder %s2532_s24, %s1780_s26  ;;  %p1785_p13 = scmp.lt.u32.totalorder %s2532_s24, %s2691_s23 }
 0x51c   : > { %p1786_p1 = scmp.lt.u32.totalorder %s1784_s0, %s1780_s26  ;;  %p1788_p11 = scmp.lt.u32.totalorder %s1780_s26, %s2532_s24 }
 0x51d   : > { %p1782_p8 = pnand %p1781_p6, %p2692_p5 }
 0x51e   : > { %p1787_p12 = por %p1786_p1, %p1785_p13 }
 0x51f   : > { %p1783_p7 = pneg %p1782_p8 }
 0x520   : > { %p1789_p2 = por %p1788_p11, %p1787_p12 }
 0x522   : > { %p1790_p0 = pnand %p1789_p2, %p1783_p7 }
 0x524   : > { %1793 = shalt.err (!%p1790_p0)
}
 0x525   : > { %1348 = dma.vmem_to_hbm [thread:$0]  (%p2692_p5), %s989_s14, 128, %s2532_s24, %s975_s29  }
 0x526 PF: > { %p1383_p3 = scmp.ge.s32.totalorder %s1904_s19, 2  ;;  %s1000_s30 = sand.u32 1, %s1876_s12  }
 0x527   : > { %p2693_p10 = scmp.ne.s32.totalorder %s2666_s7, 0  ;;  %s1001_s16 = scalar_lea.sflag [#allocation5], %s1000_s30 }
 0x529   : > { %p1379_p9 = pnand %p1383_p3, %p2693_p10 }
 0x52b   : > { %1859 = dma.done.wait (!%p1379_p9), %s1001_s16, 128  }
 0x52c   : > { %1861 = vsyncadd (!%p1379_p9), %s1001_s16, 4294967168  ;;  %s37_s19 = sadd.s32 1, %s1904_s19   ;;  %s2694_s1 = sld [smem:[#allocation25_spill]] }
 0x52d   : > { %p34_p4 = scmp.ge.s32.totalorder %s37_s19, 6   ;;  %s2695_s11 = sld [smem:[#allocation32_spill]] }
 0x52e   : > { %s2696_s3 = sld [smem:[#allocation26_spill]]  ;;  %s2697_s14 = sld [smem:[#allocation33_spill]] }
 0x52f   : > { %s2698_s16 = sld [smem:[#allocation29_spill]]  ;;  %s2699_s27 = sld [smem:[#allocation30_spill]] }
 0x530   : > { %s2700_s18 = sld [smem:[#allocation31_spill]]  ;;  %s2701_s30 = smov %s1868_s10 }
 0x531   : > { %s2703_s12 = smov %s1880_s13  ;;  %s2705_s15 = smov %s1896_s17 }
 0x532   : > { %s2702_s10 = smov %s2694_s1  ;;  %36 = sbr.rel (!%p34_p4) target bundleno = 28 (0x1c), region = 205 }
 0x534   : > { %s2704_s13 = smov %s2696_s3 }
 0x535   : > { %s2706_s17 = smov %s2699_s27 }
 0x539   :  { %1006 = vsyncpa [#allocation4], 1 }
 0x53a   :  { %1008 = vsyncpa [#allocation4 + $0x1], 1 }
 0x53b   :  { %1009 = vsyncpa [#allocation7], 1 }
 0x53c   :  { %1011 = vsyncpa [#allocation7 + $0x1], 1 }
 0x53d   :  { %1012 = vsyncpa [#allocation10], 1 }
 0x53e   :  { %1014 = vsyncpa [#allocation10 + $0x1], 1 }
 0x53f   :  { %1015 = vsyncpa [#allocation13], 1 }
 0x540   :  { %1017 = vsyncpa [#allocation13 + $0x1], 1 }
 0x541   :  { %1018 = vsyncpa [#allocation16], 1 }
 0x542   :  { %1020 = vsyncpa [#allocation16 + $0x1], 1 }
 0x543   :  { %1021 = vsyncpa [#allocation5], 1 }
 0x544   :  { %1023 = vsyncpa [#allocation5 + $0x1], 1 }

</bundles_post_ra>
